<compile_context>
chip_gen: v7x
topology: tpu7x:2x2x1
jax: 0.10.0
libtpu: 0.0.40
codegen_flags: <defaults>
</compile_context>

<pallas_src>
from functools import partial

import jax
import jax.numpy as jnp
from jax.experimental import pallas as pl
from jax.experimental.pallas import tpu as pltpu

NEG_SLOPE = 0.01                 # torch.nn.LeakyReLU default
BN_EPS = 1e-5                    # torch.nn.BatchNorm2d default
TILE_TARGET_BYTES = 4 << 20      # ~4 MiB per (C, tile_hw) block in the two-pass path
FUSED_MAX_BYTES = 8 << 20        # per-sample (C, HW) block limit for the fused path


def _leaky(v):
    return jnp.where(v > 0, v, NEG_SLOPE * v)


def _se_head(g, f1wt, f1b, f2w, f2b, bng):
    """g: (C, 1) global-average-pooled activations (f32). Returns the per-channel
    scale sigmoid(fc2(leaky(fc1(g)))) with the eval-mode BN gamma/sqrt(var) folded in.
    Both matvecs are a single vectorized broadcast + reduce (no per-row loop)."""
    h = _leaky(jnp.sum(f1wt * g, axis=0, keepdims=True) + f1b)    # (1, Cr)
    z = jnp.sum(f2w * h, axis=1, keepdims=True) + f2b             # (C, 1)
    return jax.nn.sigmoid(z) * bng                                # (C, 1)


# --------------------------------------------------------------------------------------
# Fused single-pass kernel: grid (B,), x block (1, C, HW) stays resident in VMEM.
# --------------------------------------------------------------------------------------
def se_fused_kernel(x_ref, f1wt_ref, f1b_ref, f2w_ref, f2b_ref, bng_ref, bnb_ref,
                    o_ref, *, inv_hw):
    xv = x_ref[0].astype(jnp.float32)                              # (C, HW)
    g = jnp.sum(xv, axis=-1, keepdims=True) * inv_hw               # GAP (C, 1)
    s = _se_head(g, f1wt_ref[...], f1b_ref[...], f2w_ref[...], f2b_ref[...],
                 bng_ref[...])
    o_ref[0] = _leaky(xv * s + bnb_ref[...]).astype(o_ref.dtype)


# --------------------------------------------------------------------------------------
# Two-pass path (large HW): pass 1 = tiled GAP accumulate + SE head, pass 2 = apply.
# --------------------------------------------------------------------------------------
def se_scale_kernel(x_ref, f1wt_ref, f1b_ref, f2w_ref, f2b_ref, bng_ref,
                    s_ref, acc_ref, *, inv_hw, rem):
    """Grid (B, T). Accumulates per-channel spatial sums across HW tiles; on the last
    tile (optionally lane-masked when HW % tile != 0) runs the SE FC head and emits the
    per-sample per-channel scale (BN gamma already folded)."""
    t = pl.program_id(1)
    last = pl.num_programs(1) - 1

    @pl.when(t == 0)
    def _():
        acc_ref[...] = jnp.zeros_like(acc_ref)

    xv = x_ref[0].astype(jnp.float32)                              # (C, tile)

    if rem is None:                                 # HW divisible by tile: no masking
        acc_ref[...] += jnp.sum(xv, axis=-1, keepdims=True)
    else:                                           # ragged last tile: static lane mask
        @pl.when(t != last)
        def _():
            acc_ref[...] += jnp.sum(xv, axis=-1, keepdims=True)

        @pl.when(t == last)
        def _():
            lane = jax.lax.broadcasted_iota(jnp.int32, xv.shape, 1)
            acc_ref[...] += jnp.sum(jnp.where(lane < rem, xv, 0.0),
                                    axis=-1, keepdims=True)

    @pl.when(t == last)
    def _():
        g = acc_ref[...] * inv_hw                                  # true-HW mean
        s = _se_head(g, f1wt_ref[...], f1b_ref[...], f2w_ref[...], f2b_ref[...],
                     bng_ref[...])
        s_ref[0] = s.astype(s_ref.dtype)


def se_apply_kernel(x_ref, s_ref, bnb_ref, o_ref):
    """Pass 2: out = LeakyReLU(x * scale + bn_bias), elementwise on (C, tile) tiles.
    Ragged last tile: garbage input lanes only produce garbage output lanes, which are
    boundary-clipped by the (B, C, HW) out_shape."""
    o_ref[0] = _leaky(x_ref[0].astype(jnp.float32) * s_ref[0]
                      + bnb_ref[...]).astype(o_ref.dtype)


# --------------------------------------------------------------------------------------
# Wrapper
# --------------------------------------------------------------------------------------
def channel_se_pallas(x_nchw, params, *, tile_target_bytes=TILE_TARGET_BYTES,
                      fused_max_bytes=FUSED_MAX_BYTES):
    """ChannelSELayer forward (eval mode). x_nchw: (B, C, H, W)."""
    f1w_t, f1b, f2w, f2b, bn_scale, bn_bias = params
    B, C, H, W = x_nchw.shape
    HW = H * W
    itemsize = x_nchw.dtype.itemsize
    inv_hw = 1.0 / HW

    x = x_nchw.reshape(B, C, HW)      # no transpose: NCHW is already (B, C, HW)

    def full_spec_1(p):               # untiled param, grid rank 1
        return pl.BlockSpec(p.shape, lambda b: (0,) * p.ndim)

    def full_spec_2(p):               # untiled param, grid rank 2
        return pl.BlockSpec(p.shape, lambda b, t: (0,) * p.ndim)

    sample_bytes = C * HW * itemsize

    # ---- fused single-pass path: whole sample resident in VMEM -> 2x|x| HBM traffic --
    if sample_bytes <= fused_max_bytes:
        vmem_limit = min(4 * sample_bytes + (4 << 20), 48 << 20)
        out = pl.pallas_call(
            partial(se_fused_kernel, inv_hw=inv_hw),
            out_shape=jax.ShapeDtypeStruct((B, C, HW), x.dtype),
            grid_spec=pltpu.PrefetchScalarGridSpec(
                num_scalar_prefetch=0,
                grid=(B,),
                in_specs=[pl.BlockSpec((1, C, HW), lambda b: (b, 0, 0)),
                          full_spec_1(f1w_t), full_spec_1(f1b), full_spec_1(f2w),
                          full_spec_1(f2b), full_spec_1(bn_scale),
                          full_spec_1(bn_bias)],
                out_specs=pl.BlockSpec((1, C, HW), lambda b: (b, 0, 0)),
            ),
            compiler_params=pltpu.CompilerParams(
                dimension_semantics=("parallel",),
                vmem_limit_bytes=vmem_limit),
            cost_estimate=pl.CostEstimate(
                flops=4 * B * C * HW,
                transcendentals=B * C,
                bytes_accessed=2 * B * C * HW * itemsize),
        )(x, f1w_t, f1b, f2w, f2b, bn_scale, bn_bias)
        return out.reshape(B, C, H, W)

    # ---- two-pass path: adaptive lane-dense tiles, ragged last tile masked in-kernel -
    tile = max((tile_target_bytes // (C * itemsize)) // 128 * 128, 128)
    tile = min(tile, HW)
    T = pl.cdiv(HW, tile)
    last_valid = HW - (T - 1) * tile
    rem = None if last_valid == tile else last_valid     # static ragged-tile extent

    block_bytes = C * tile * itemsize
    x_spec = pl.BlockSpec((1, C, tile), lambda b, t: (b, 0, t))
    s_spec = pl.BlockSpec((1, C, 1), lambda b, t: (b, 0, 0))

    # pass 1: tiled GAP accumulate + fc1 -> LeakyReLU -> fc2 -> sigmoid (BN gamma folded)
    s = pl.pallas_call(
        partial(se_scale_kernel, inv_hw=inv_hw, rem=rem),
        out_shape=jax.ShapeDtypeStruct((B, C, 1), jnp.float32),
        grid_spec=pltpu.PrefetchScalarGridSpec(
            num_scalar_prefetch=0,
            grid=(B, T),
            in_specs=[x_spec, full_spec_2(f1w_t), full_spec_2(f1b),
                      full_spec_2(f2w), full_spec_2(f2b), full_spec_2(bn_scale)],
            out_specs=s_spec,
            scratch_shapes=[pltpu.VMEM((C, 1), jnp.float32)],
        ),
        compiler_params=pltpu.CompilerParams(
            dimension_semantics=("parallel", "arbitrary"),
            vmem_limit_bytes=min(2 * block_bytes + (4 << 20), 48 << 20)),
        cost_estimate=pl.CostEstimate(
            flops=B * C * HW,
            transcendentals=B * C,
            bytes_accessed=B * C * HW * itemsize + B * C * 4),
    )(x, f1w_t, f1b, f2w, f2b, bn_scale)

    # pass 2: out = LeakyReLU(x * s + bn_bias), lane-dense tiles, no pad / no slice
    out = pl.pallas_call(
        se_apply_kernel,
        out_shape=jax.ShapeDtypeStruct((B, C, HW), x.dtype),
        grid_spec=pltpu.PrefetchScalarGridSpec(
            num_scalar_prefetch=0,
            grid=(B, T),
            in_specs=[x_spec, s_spec, full_spec_2(bn_bias)],
            out_specs=x_spec,
        ),
        compiler_params=pltpu.CompilerParams(
            dimension_semantics=("parallel", "parallel"),
            vmem_limit_bytes=min(4 * block_bytes + (4 << 20), 48 << 20)),
        cost_estimate=pl.CostEstimate(
            flops=3 * B * C * HW,
            transcendentals=0,
            bytes_accessed=2 * B * C * HW * itemsize + B * C * 4),
    )(x, s, bn_bias)

    return out.reshape(B, C, H, W)


# --------------------------------------------------------------------------------------
# Pure-JAX reference + synthetic parameters
# --------------------------------------------------------------------------------------
def channel_se_ref(x_nchw, params):
    """Pure-JAX reference using the same (folded, eval-mode) parameters."""
    f1w_t, f1b, f2w, f2b, bn_scale, bn_bias = params
    g = jnp.mean(x_nchw, axis=(2, 3))                              # (B, C)
    h = _leaky(g @ f1w_t + f1b)                                    # (B, Cr)
    s = jax.nn.sigmoid(h @ f2w.T + f2b[:, 0])                      # (B, C)
    y = x_nchw * s[:, :, None, None]
    y = y * bn_scale[:, 0][None, :, None, None] + bn_bias[:, 0][None, :, None, None]
    return _leaky(y)


def make_params(key, C):
    """Deterministic synthetic ChannelSELayer parameters, eval-mode BN folded."""
    assert C % 8 == 0 and C >= 8, "reduction_ratio=8 requires C to be a multiple of 8"
    cr = C // 8
    keys = iter(jax.random.split(key, 8))

    def n(shape, scale=0.1):
        return (jax.random.normal(next(keys), shape) * scale).astype(jnp.float32)

    def u(shape, lo=0.5, hi=1.5):
        return jax.random.uniform(next(keys), shape, jnp.float32, lo, hi)

    f1w_t = n((C, cr))            # torch fc1.weight (Cr, C), stored transposed -> (C, Cr)
    f1b = n((1, cr))              # fc1.bias as row
    f2w = n((C, cr))              # torch fc2.weight (C, Cr), used as-is
    f2b = n((C, 1))               # fc2.bias as column
    # eval-mode BatchNorm2d fold: scale = gamma / sqrt(var + eps), bias = beta - mean*scale
    gamma, beta = u((C,)), n((C,))
    mean, var = n((C,)), u((C,))
    scale = gamma / jnp.sqrt(var + BN_EPS)
    bias = beta - mean * scale
    return f1w_t, f1b, f2w, f2b, scale.reshape(C, 1), bias.reshape(C, 1)


if __name__ == "__main__":
    key = jax.random.PRNGKey(0)
    kx, kp, kx2 = jax.random.split(key, 3)

    B, C, H, W = 2, 64, 16, 16     # C must be a multiple of 8 (reduction_ratio = 8)
    x = jax.random.normal(kx, (B, C, H, W), jnp.float32)
    params = make_params(kp, C)

    # default dispatch -> fused single-pass path (sample fits VMEM)
    y = channel_se_pallas(x, params)
    jax.block_until_ready(y)
    r = channel_se_ref(x, params)
    assert y.shape == r.shape and y.dtype == r.dtype
    err = float(jnp.max(jnp.abs(y - r)))
    assert err < 1e-4, f"fused path mismatch vs reference: {err}"

    # also exercise the tiled two-pass path with a ragged last HW tile (HW=400, tile=128)
    x2 = jax.random.normal(kx2, (B, C, 20, 20), jnp.float32)
    y2 = channel_se_pallas(x2, params, tile_target_bytes=128 * C * 4, fused_max_bytes=0)
    jax.block_until_ready(y2)
    r2 = channel_se_ref(x2, params)
    err2 = float(jnp.max(jnp.abs(y2 - r2)))
    assert err2 < 1e-4, f"tiled path mismatch vs reference: {err2}"

    print("KERNEL_OK")
</pallas_src>

<mosaic_0001>
module attributes {stable_mosaic.version = 11 : i64} {
  func.func @se_fused_kernel(%arg0: i32, %arg1: memref<1x64x256xf32, #tpu.memory_space<vmem>>, %arg2: memref<64x8xf32, #tpu.memory_space<vmem>>, %arg3: memref<1x8xf32, #tpu.memory_space<vmem>>, %arg4: memref<64x8xf32, #tpu.memory_space<vmem>>, %arg5: memref<64x1xf32, #tpu.memory_space<vmem>>, %arg6: memref<64x1xf32, #tpu.memory_space<vmem>>, %arg7: memref<64x1xf32, #tpu.memory_space<vmem>>, %arg8: memref<1x64x256xf32, #tpu.memory_space<vmem>>) attributes {dimension_semantics = [#tpu.dimension_semantics<parallel>], iteration_bounds = array<i64: 2>, scalar_prefetch = 0 : i64, scratch_operands = 0 : i64, tpu.core_type = #tpu.core_type<tc>, window_params = [{transform_indices = @transform_0, window_bounds = array<i64: 1, 64, 256>}, {pipeline_mode = #tpu.pipeline_mode<synchronous>, transform_indices = @transform_1, window_bounds = array<i64: 64, 8>}, {pipeline_mode = #tpu.pipeline_mode<synchronous>, transform_indices = @transform_2, window_bounds = array<i64: 1, 8>}, {pipeline_mode = #tpu.pipeline_mode<synchronous>, transform_indices = @transform_3, window_bounds = array<i64: 64, 8>}, {pipeline_mode = #tpu.pipeline_mode<synchronous>, transform_indices = @transform_4, window_bounds = array<i64: 64, 1>}, {pipeline_mode = #tpu.pipeline_mode<synchronous>, transform_indices = @transform_5, window_bounds = array<i64: 64, 1>}, {pipeline_mode = #tpu.pipeline_mode<synchronous>, transform_indices = @transform_6, window_bounds = array<i64: 64, 1>}, {transform_indices = @transform_7, window_bounds = array<i64: 1, 64, 256>}]} {
    %c0 = arith.constant 0 : index
    %c0_0 = arith.constant 0 : index
    %c0_1 = arith.constant 0 : index
    %0 = vector.load %arg1[%c0, %c0_0, %c0_1] : memref<1x64x256xf32, #tpu.memory_space<vmem>>, vector<1x64x256xf32>
    %1 = vector.shape_cast %0 : vector<1x64x256xf32> to vector<64x256xf32>
    %cst = arith.constant dense<0.000000e+00> : vector<64xf32>
    %2 = vector.multi_reduction <add>, %1, %cst [1] : vector<64x256xf32> to vector<64xf32>
    %3 = vector.shape_cast %2 : vector<64xf32> to vector<64x1xf32>
    %cst_2 = arith.constant 3.906250e-03 : f32
    %4 = vector.broadcast %cst_2 : f32 to vector<64x1xf32>
    %5 = arith.mulf %3, %4 : vector<64x1xf32>
    %c0_3 = arith.constant 0 : index
    %c0_4 = arith.constant 0 : index
    %6 = vector.load %arg2[%c0_3, %c0_4] : memref<64x8xf32, #tpu.memory_space<vmem>>, vector<64x8xf32>
    %c0_5 = arith.constant 0 : index
    %c0_6 = arith.constant 0 : index
    %7 = vector.load %arg3[%c0_5, %c0_6] : memref<1x8xf32, #tpu.memory_space<vmem>>, vector<1x8xf32>
    %c0_7 = arith.constant 0 : index
    %c0_8 = arith.constant 0 : index
    %8 = vector.load %arg4[%c0_7, %c0_8] : memref<64x8xf32, #tpu.memory_space<vmem>>, vector<64x8xf32>
    %c0_9 = arith.constant 0 : index
    %c0_10 = arith.constant 0 : index
    %9 = vector.load %arg5[%c0_9, %c0_10] : memref<64x1xf32, #tpu.memory_space<vmem>>, vector<64x1xf32>
    %c0_11 = arith.constant 0 : index
    %c0_12 = arith.constant 0 : index
    %10 = vector.load %arg6[%c0_11, %c0_12] : memref<64x1xf32, #tpu.memory_space<vmem>>, vector<64x1xf32>
    %11 = vector.broadcast %5 : vector<64x1xf32> to vector<64x8xf32>
    %12 = arith.mulf %6, %11 : vector<64x8xf32>
    %cst_13 = arith.constant dense<0.000000e+00> : vector<8xf32>
    %13 = vector.multi_reduction <add>, %12, %cst_13 [0] : vector<64x8xf32> to vector<8xf32>
    %14 = vector.shape_cast %13 : vector<8xf32> to vector<1x8xf32>
    %15 = arith.addf %14, %7 : vector<1x8xf32>
    %cst_14 = arith.constant 0.000000e+00 : f32
    %16 = vector.broadcast %cst_14 : f32 to vector<1x8xf32>
    %17 = arith.cmpf ogt, %15, %16 : vector<1x8xf32>
    %cst_15 = arith.constant 0.00999999977 : f32
    %18 = vector.broadcast %cst_15 : f32 to vector<1x8xf32>
    %19 = arith.mulf %18, %15 : vector<1x8xf32>
    %20 = arith.select %17, %15, %19 : vector<1x8xi1>, vector<1x8xf32>
    %21 = vector.broadcast %20 : vector<1x8xf32> to vector<64x8xf32>
    %22 = arith.mulf %8, %21 : vector<64x8xf32>
    %cst_16 = arith.constant dense<0.000000e+00> : vector<64xf32>
    %23 = vector.multi_reduction <add>, %22, %cst_16 [1] : vector<64x8xf32> to vector<64xf32>
    %24 = vector.shape_cast %23 : vector<64xf32> to vector<64x1xf32>
    %25 = arith.addf %24, %9 : vector<64x1xf32>
    %26 = arith.negf %25 : vector<64x1xf32>
    %27 = math.exp %26 : vector<64x1xf32>
    %cst_17 = arith.constant 1.000000e+00 : f32
    %28 = vector.broadcast %cst_17 : f32 to vector<64x1xf32>
    %29 = arith.addf %28, %27 : vector<64x1xf32>
    %30 = arith.divf %28, %29 : vector<64x1xf32>
    %31 = arith.mulf %30, %10 : vector<64x1xf32>
    %32 = vector.broadcast %31 : vector<64x1xf32> to vector<64x256xf32>
    %33 = arith.mulf %1, %32 : vector<64x256xf32>
    %c0_18 = arith.constant 0 : index
    %c0_19 = arith.constant 0 : index
    %34 = vector.load %arg7[%c0_18, %c0_19] : memref<64x1xf32, #tpu.memory_space<vmem>>, vector<64x1xf32>
    %35 = vector.broadcast %34 : vector<64x1xf32> to vector<64x256xf32>
    %36 = arith.addf %33, %35 : vector<64x256xf32>
    %cst_20 = arith.constant 0.000000e+00 : f32
    %37 = vector.broadcast %cst_20 : f32 to vector<64x256xf32>
    %38 = arith.cmpf ogt, %36, %37 : vector<64x256xf32>
    %cst_21 = arith.constant 0.00999999977 : f32
    %39 = vector.broadcast %cst_21 : f32 to vector<64x256xf32>
    %40 = arith.mulf %39, %36 : vector<64x256xf32>
    %41 = arith.select %38, %36, %40 : vector<64x256xi1>, vector<64x256xf32>
    %c0_22 = arith.constant 0 : index
    %c0_23 = arith.constant 0 : index
    %c0_24 = arith.constant 0 : index
    %42 = vector.load %arg8[%c0_22, %c0_23, %c0_24] : memref<1x64x256xf32, #tpu.memory_space<vmem>>, vector<1x64x256xf32>
    %43 = vector.shape_cast %42 : vector<1x64x256xf32> to vector<64x256xf32>
    %44 = vector.shape_cast %41 : vector<64x256xf32> to vector<1x64x256xf32>
    tpu.vector_store %arg8[%c0_22, %c0_23, %c0_24], %44 {strides = array<i32>} : memref<1x64x256xf32, #tpu.memory_space<vmem>>, vector<1x64x256xf32>,
    return
  }
  func.func @transform_0(%arg0: i32) -> (i32, i32, i32) {
    %c0_i32 = arith.constant 0 : i32
    %c0_i32_0 = arith.constant 0 : i32
    %c0_i32_1 = arith.constant 0 : i32
    return %arg0, %c0_i32, %c0_i32_0 : i32, i32, i32
  }
  func.func @transform_1(%arg0: i32) -> (i32, i32) {
    %c0_i32 = arith.constant 0 : i32
    %c0_i32_0 = arith.constant 0 : i32
    %c0_i32_1 = arith.constant 0 : i32
    return %c0_i32, %c0_i32_0 : i32, i32
  }
  func.func @transform_2(%arg0: i32) -> (i32, i32) {
    %c0_i32 = arith.constant 0 : i32
    %c0_i32_0 = arith.constant 0 : i32
    %c0_i32_1 = arith.constant 0 : i32
    return %c0_i32, %c0_i32_0 : i32, i32
  }
  func.func @transform_3(%arg0: i32) -> (i32, i32) {
    %c0_i32 = arith.constant 0 : i32
    %c0_i32_0 = arith.constant 0 : i32
    %c0_i32_1 = arith.constant 0 : i32
    return %c0_i32, %c0_i32_0 : i32, i32
  }
  func.func @transform_4(%arg0: i32) -> (i32, i32) {
    %c0_i32 = arith.constant 0 : i32
    %c0_i32_0 = arith.constant 0 : i32
    %c0_i32_1 = arith.constant 0 : i32
    return %c0_i32, %c0_i32_0 : i32, i32
  }
  func.func @transform_5(%arg0: i32) -> (i32, i32) {
    %c0_i32 = arith.constant 0 : i32
    %c0_i32_0 = arith.constant 0 : i32
    %c0_i32_1 = arith.constant 0 : i32
    return %c0_i32, %c0_i32_0 : i32, i32
  }
  func.func @transform_6(%arg0: i32) -> (i32, i32) {
    %c0_i32 = arith.constant 0 : i32
    %c0_i32_0 = arith.constant 0 : i32
    %c0_i32_1 = arith.constant 0 : i32
    return %c0_i32, %c0_i32_0 : i32, i32
  }
  func.func @transform_7(%arg0: i32) -> (i32, i32, i32) {
    %c0_i32 = arith.constant 0 : i32
    %c0_i32_0 = arith.constant 0 : i32
    %c0_i32_1 = arith.constant 0 : i32
    return %arg0, %c0_i32, %c0_i32_0 : i32, i32, i32
  }
}

</mosaic_0001>

<bundles_post_ra>
// kernel: tpu_custom_call.1
= control target key start
LH: loop header
LB: loop body
LE: loop exit
PB: predicated region body
PF: predicated region fallthrough
CT: control target
= control target key end

     0   :  { %12 = vsyncpa [#allocation3], 0  ;;  %s1291_s0 = inlined_call_operand.vmem [shape: f32[2,64,256], index: 0, kind: input, shape index: {}]   ;;  %s1292_s1 = inlined_call_operand.vmem [shape: f32[64,8], index: 1, kind: input, shape index: {}]   ;;  %s1293_s2 = inlined_call_operand.vmem [shape: f32[1,8], index: 2, kind: input, shape index: {}]   ;;  %s1294_s3 = inlined_call_operand.vmem [shape: f32[64,8], index: 3, kind: input, shape index: {}]   ;;  %s1295_s4 = inlined_call_operand.vmem [shape: f32[64,1], index: 4, kind: input, shape index: {}]   ;;  %s1296_s5 = inlined_call_operand.vmem [shape: f32[64,1], index: 5, kind: input, shape index: {}]   ;;  %s1297_s6 = inlined_call_operand.vmem [shape: f32[64,1], index: 6, kind: input, shape index: {}]   ;;  %s1298_s7 = inlined_call_operand.hbm [shape: f32[2,64,256], index: 7, kind: output, shape index: {}]  }
   0x1   :  { %14 = vsyncpa [#allocation3 + $0x1], 0  ;;  %s958_s24 = smov 0   ;;  %s960_s25 = smov 0  }
   0x2   :  { %s962_s26 = smov 0   ;;  %s964_s27 = smov 0  }
   0x3 LB: > { %s979_s28 = sadd.s32 4294967295, %s912_s27   ;;  %s752_s29 = sadd.s32 4294967294, %s912_s27   ;;  %s912_s27 = sphi %s964_s27, %s1304_s27   ;;  %s908_s26 = sphi %s962_s26, %s1303_s26   ;;  %s904_s25 = sphi %s960_s25, %s1302_s25   ;;  %s900_s24 = sphi %s958_s24, %s1301_s24  }
   0x4   : > { %s983_s30 = sadd.s32 1, %s912_s27   ;;  %s179_s8 = sadd.s32 1, %s908_s26 }
   0x5   : > { %s176_s9 = ssub.s32 %s912_s27, %s983_s30  ;;  %p189_p0 = scmp.ne.s32.totalorder %s908_s26, %s904_s25 }
   0x6   : > { %p177_p1 = scmp.eq.s32.totalorder %s176_s9, 0  ;;  %p190_p2 = scmp.eq.s32.totalorder %s979_s28, 1 }
   0x7   : > { %p195_p3 = scmp.ne.s32.totalorder %s904_s25, %s900_s24  ;;  %p196_p4 = scmp.eq.s32.totalorder %s752_s29, 1 }
   0x8   : > { %s994_s10 = scalar_select %p177_p1, %s908_s26, %s179_s8  }
   0x9   : > { %p996_p5 = por %p190_p2, %p189_p0  ;;  %p1000_p6 = por %p196_p4, %p195_p3 }
   0xa   : > { %p755_p7 = scmp.ge.s32.totalorder %s912_s27, 1  ;;  %p240_p8 = scmp.lt.s32.totalorder %s912_s27, 3 }
   0xc   : > { %p241_p9 = pnand %p755_p7, %p240_p8 }
   0xd   : > { %p272_p10 = scmp.lt.s32.totalorder (!%p241_p9), %s979_s28, 1  ;;  %v325_v27 = vld [vmem:[%s1292_s1] sm:$0xff] (!%p241_p9)  ;;  %v327_v29 = vld [vmem:[%s1292_s1 + $0x10] sm:$0xff] (!%p241_p9)  ;;  %v326_v30 = vld [vmem:[%s1292_s1 + $0x8] sm:$0xff] (!%p241_p9)  ;;  %vm366_vm0 = vcmask (!%p241_p9), 64512   ;;  %s269_s16 = sand.u32 (!%p241_p9), 1, %s904_s25  }
   0xe   : > { %244 = sbr.rel (%p241_p9) target bundleno = 566 (0x236), region = 48  ;;  %v328_v34 = vld [vmem:[%s1292_s1 + $0x18] sm:$0xff] (!%p241_p9)  ;;  %v329_v40 = vld [vmem:[%s1292_s1 + $0x20] sm:$0xff] (!%p241_p9)  ;;  %v330_v45 = vld [vmem:[%s1292_s1 + $0x28] sm:$0xff] (!%p241_p9)  ;;  %s773_s19 = sshll.u32 (!%p241_p9), %s979_s28, 11 }
   0xf   : > { %v331_v54 = vld [vmem:[%s1292_s1 + $0x30] sm:$0xff] (!%p241_p9)  ;;  %v332_v58 = vld [vmem:[%s1292_s1 + $0x38] sm:$0xff] (!%p241_p9)  ;;  %s1242_s22 = scalar_lea.hbm (!%p241_p9), %s1298_s7, %s773_s19  ;;  %s1250_s23 = scalar_lea.sflag (!%p241_p9), [#allocation3], %s269_s16 }
  0x10   : > { %s915_s8 = smov (!%p241_p9), [#allocation2]  }
  0x11   : > { %s854_s9 = sshll.u32 (!%p241_p9), %s915_s8, 4  ;;  %s855_s9 = int_to_ptr.vmem [resolvable:$false] %s854_s9 }
  0x15   : > { %s273_s13 = scalar_select %p272_p10, %s979_s28, 1 }
  0x17   : > { %s772_s14 = sshll.u32 %s273_s13, 7  ;;  %s856_s13 = scalar_lea.vmem %s855_s9, 4096 }
  0x18   : > { %s276_s17 = scalar_lea.vmem %s1291_s0, %s772_s14 }
  0x19   : > { %v1011_v0 = vld [vmem:[%s276_s17] sm:$0xff]  ;;  %v1013_v1 = vld [vmem:[%s276_s17 + $0x8] sm:$0xff]  ;;  %v1021_v5 = vld [vmem:[%s276_s17 + $0x10] sm:$0xff] }
  0x1a   : > { %v1015_v2 = vld [vmem:[%s276_s17 + $0x20] sm:$0xff]  ;;  %v293_v3 = vadd.f32 %v1013_v1, %v1011_v0  ;;  %v1019_v4 = vld [vmem:[%s276_s17 + $0x28] sm:$0xff]  ;;  %v1023_v6 = vld [vmem:[%s276_s17 + $0x18] sm:$0xff] }
  0x1b   : > { %v299_v7 = vadd.f32 %v1019_v4, %v1015_v2  ;;  %v1027_v8 = vld [vmem:[%s276_s17 + $0x30] sm:$0xff]  ;;  %v1029_v9 = vld [vmem:[%s276_s17 + $0x38] sm:$0xff]  ;;  %v296_v10 = vadd.f32 %v1023_v6, %v1021_v5  ;;  %v1035_v12 = vld [vmem:[%s276_s17 + $0x40] sm:$0xff] }
  0x1c   : > { %294 = vadd.xlane.f32.xlu0 %v293_v3  ;;  %v302_v11 = vadd.f32 %v1029_v9, %v1027_v8  ;;  %v1037_v13 = vld [vmem:[%s276_s17 + $0x48] sm:$0xff]  ;;  %v1039_v14 = vld [vmem:[%s276_s17 + $0x50] sm:$0xff]  ;;  %v1041_v15 = vld [vmem:[%s276_s17 + $0x58] sm:$0xff] }
  0x1d   : > { %300 = vadd.xlane.f32.xlu1 %v299_v7  ;;  %v305_v16 = vadd.f32 %v1037_v13, %v1035_v12  ;;  %v308_v17 = vadd.f32 %v1041_v15, %v1039_v14  ;;  %v1047_v18 = vld [vmem:[%s276_s17 + $0x60] sm:$0xff]  ;;  %v1049_v19 = vld [vmem:[%s276_s17 + $0x68] sm:$0xff]  ;;  %v1051_v20 = vld [vmem:[%s276_s17 + $0x70] sm:$0xff] }
  0x1e   : > { %v1053_v21 = vld [vmem:[%s276_s17 + $0x78] sm:$0xff]  ;;  %v311_v22 = vadd.f32 %v1049_v19, %v1047_v18  ;;  %s756_s17 = sshll.u32 %s269_s16, 7 }
  0x1f   : > { %v314_v23 = vadd.f32 %v1053_v21, %v1051_v20  ;;  %s1209_s18 = scalar_lea.vmem [#allocation2], %s756_s17 }
  0x20   : > { %297 = vadd.xlane.f32.xlu0 %v296_v10  ;;  %s690_s20 = sshll.u32 %s1209_s18, 4  ;;  %s1244_s20 = int_to_ptr.vmem [resolvable:$true] %s690_s20 }
  0x21   : > { %303 = vadd.xlane.f32.xlu1 %v302_v11  ;;  %s850_s29 = scalar_lea.vmem %s1244_s20, 2048  ;;  %p857_p0 = scmp.lt.s32.totalorder %s1244_s20, %s855_s9 }
  0x22   : > { %p851_p11 = scmp.ne.s32.totalorder %s1244_s20, %s850_s29  ;;  %p858_p1 = scmp.lt.s32.totalorder %s856_s13, %s850_s29 }
  0x24   : > { %306 = vadd.xlane.f32.xlu0 %v305_v16  ;;  %p852_p12 = pnand %p851_p11, %p996_p5  ;;  %p859_p2 = por %p858_p1, %p857_p0 }
  0x25   : > { %309 = vadd.xlane.f32.xlu1 %v308_v17 }
  0x26   : > { %p853_p13 = pneg %p852_p12 }
  0x28   : > { %312 = vadd.xlane.f32.xlu0 %v311_v22  ;;  %p860_p3 = pnand %p859_p2, %p853_p13 }
  0x29   : > { %315 = vadd.xlane.f32.xlu1 %v314_v23 }
  0xa9   : > { %v295_v24 = vpop.xlane.xlu0 %294 }
  0xaa   : > { %v317_v25 = vmul.f32 0.00390625, %v295_v24  ;;  %v301_v26 = vpop.xlane.xlu1 %300 }
  0xab   : > { %v319_v28 = vmul.f32 0.00390625, %v301_v26  ;;  %v392_v26 = vlaneseq }
  0xac   : > { %v358_v32 = vmul.f32 %v325_v27, %v317_v25 }
  0xad   : > { %v298_v31 = vpop.xlane.xlu0 %297  ;;  %v360_v37 = vmul.f32 %v327_v29, %v319_v28  ;;  %v333_v29 = vld [vmem:[%s1293_s2] sm:$0x1] }
  0xae   : > { %v318_v33 = vmul.f32 0.00390625, %v298_v31  ;;  %v304_v35 = vpop.xlane.xlu1 %303  ;;  %v367_v42 = vsel %vm366_vm0, %v358_v32, 0.0 }
  0xaf   : > { %v320_v36 = vmul.f32 0.00390625, %v304_v35  ;;  %v370_v49 = vsel %vm366_vm0, %v360_v37, 0.0  ;;  %v334_v37 = vld [vmem:[%s1294_s3] sm:$0xff] }
  0xb0   : > { %v359_v38 = vmul.f32 %v326_v30, %v318_v33  ;;  %v393_v30 = vshrl.u32 %v392_v26, 7  ;;  %v345_v26 = vld [vmem:[%s1295_s4 + $0x18] sm:$0xff] }
  0xb1   : > { %v361_v39 = vmul.f32 %v328_v34, %v320_v36  ;;  %v307_v41 = vpop.xlane.xlu0 %306  ;;  %v335_v36 = vld [vmem:[%s1294_s3 + $0x8] sm:$0xff] }
  0xb2   : > { %v368_v43 = vsel %vm366_vm0, %v359_v38, 0.0  ;;  %v321_v44 = vmul.f32 0.00390625, %v307_v41  ;;  %v310_v46 = vpop.xlane.xlu1 %309  ;;  %v394_v33 = vsub.s32 0, %v393_v30 }
  0xb3   : > { %v369_v47 = vadd.f32 %v368_v43, %v367_v42  ;;  %v322_v48 = vmul.f32 0.00390625, %v310_v46  ;;  %v372_v50 = vsel %vm366_vm0, %v361_v39, 0.0  ;;  %v337_v39 = vld [vmem:[%s1294_s3 + $0x18] sm:$0xff] }
  0xb4   : > { %v362_v51 = vmul.f32 %v329_v40, %v321_v44  ;;  %v336_v40 = vld [vmem:[%s1294_s3 + $0x10] sm:$0xff] }
  0xb5   : > { %v371_v52 = vadd.f32 %v370_v49, %v369_v47  ;;  %v363_v53 = vmul.f32 %v330_v45, %v322_v48  ;;  %v313_v55 = vpop.xlane.xlu0 %312  ;;  %v339_v47 = vld [vmem:[%s1294_s3 + $0x28] sm:$0xff]  ;;  %v338_v48 = vld [vmem:[%s1294_s3 + $0x20] sm:$0xff] }
  0xb6   : > { %v374_v56 = vsel %vm366_vm0, %v362_v51, 0.0  ;;  %v323_v57 = vmul.f32 0.00390625, %v313_v55  ;;  %v316_v59 = vpop.xlane.xlu1 %315 }
  0xb7   : > { %v373_v60 = vadd.f32 %v372_v50, %v371_v52  ;;  %v324_v61 = vmul.f32 0.00390625, %v316_v59  ;;  %v376_v62 = vsel %vm366_vm0, %v363_v53, 0.0  ;;  %v341_v53 = vld [vmem:[%s1294_s3 + $0x38] sm:$0xff] }
  0xb8   : > { %v364_v63 = vmul.f32 %v331_v54, %v323_v57  ;;  %v340_v54 = vld [vmem:[%s1294_s3 + $0x30] sm:$0xff] }
  0xb9   : > { %v375_v3 = vadd.f32 %v374_v56, %v373_v60  ;;  %v365_v7 = vmul.f32 %v332_v58, %v324_v61  ;;  %v914_v61 = vmov 0  }
  0xba   : > { %v378_v10 = vsel %vm366_vm0, %v364_v63, 0.0  ;;  %816 = vset.pattern.permute.xlu1 %v914_v61  ;;  %817 = vset.pattern.permute.xlu0 %v914_v61  ;;  %v550_v63 = vld [vmem:[%s1297_s6 + $0x10] sm:$0xff] }
  0xbb   : > { %v377_v11 = vadd.f32 %v376_v62, %v375_v3  ;;  %v380_v16 = vsel %vm366_vm0, %v365_v7, 0.0  ;;  %v548_v62 = vld [vmem:[%s1297_s6] sm:$0xff]  ;;  %v549_v7 = vld [vmem:[%s1297_s6 + $0x8] sm:$0xff] }
  0xbc   : > { %v552_v3 = vld [vmem:[%s1297_s6 + $0x20] sm:$0xff] }
  0xbd   : > { %v379_v17 = vadd.f32 %v378_v10, %v377_v11  ;;  %v551_v10 = vld [vmem:[%s1297_s6 + $0x18] sm:$0xff]  ;;  %v553_v11 = vld [vmem:[%s1297_s6 + $0x28] sm:$0xff] }
  0xbf   : > { %v381_v22 = vadd.f32 %v380_v16, %v379_v17  ;;  %v343_v16 = vld [vmem:[%s1295_s4 + $0x8] sm:$0xff]  ;;  %v342_v17 = vld [vmem:[%s1295_s4] sm:$0xff] }
  0xc1   : > { %v382_v23 = vrot.slane %v381_v22, 4 }
  0xc3   : > { %v383_v24 = vadd.f32 %v382_v23, %v381_v22 }
  0xc5   : > { %v384_v25 = vrot.slane %v383_v24, 2 }
  0xc7   : > { %v385_v27 = vadd.f32 %v384_v25, %v383_v24 }
  0xc9   : > { %v386_v28 = vrot.slane %v385_v27, 1 }
  0xcb   : > { %v387_v31 = vadd.f32 %v386_v28, %v385_v27  ;;  %v344_v27 = vld [vmem:[%s1295_s4 + $0x10] sm:$0xff] }
  0xcd   : > { %v388_v32 = vadd.f32 %v387_v31, %v333_v29 }
  0xcf   : > { %vm389_vm1 = vcmp.gt.f32.partialorder %v388_v32, 0.0  ;;  %v390_v34 = vmul.f32 0.01, %v388_v32 }
  0xd1   : > { %v391_v35 = vsel %vm389_vm1, %v388_v32, %v390_v34  ;;  %v347_v34 = vld [vmem:[%s1295_s4 + $0x28] sm:$0xff] }
  0xd2   : > { %v395_v38 = vrot.slane %v391_v35, %v394_v33  ;;  %v346_v35 = vld [vmem:[%s1295_s4 + $0x20] sm:$0xff] }
  0xd4   : > { %v397_v41 = vmul.f32 %v395_v38, %v335_v36  ;;  %v396_v42 = vmul.f32 %v395_v38, %v334_v37  ;;  %v399_v45 = vmul.f32 %v395_v38, %v337_v39  ;;  %v398_v46 = vmul.f32 %v395_v38, %v336_v40 }
  0xd5   : > { %v401_v51 = vmul.f32 %v395_v38, %v339_v47  ;;  %v400_v52 = vmul.f32 %v395_v38, %v338_v48  ;;  %v403_v57 = vmul.f32 %v395_v38, %v341_v53  ;;  %v402_v58 = vmul.f32 %v395_v38, %v340_v54 }
  0xd6   : > { %v407_v43 = vsel %vm366_vm0, %v397_v41, 0.0  ;;  %v404_v44 = vsel %vm366_vm0, %v396_v42, 0.0  ;;  %v413_v49 = vsel %vm366_vm0, %v399_v45, 0.0  ;;  %v410_v50 = vsel %vm366_vm0, %v398_v46, 0.0  ;;  %v348_v42 = vld [vmem:[%s1295_s4 + $0x30] sm:$0xff]  ;;  %v349_v46 = vld [vmem:[%s1295_s4 + $0x38] sm:$0xff] }
  0xd7   : > { %408 = vadd.xlane.f32.xlu1 %v407_v43  ;;  %405 = vadd.xlane.f32.xlu0 %v404_v44  ;;  %v419_v55 = vsel %vm366_vm0, %v401_v51, 0.0  ;;  %v416_v56 = vsel %vm366_vm0, %v400_v52, 0.0  ;;  %v425_v59 = vsel %vm366_vm0, %v403_v57, 0.0  ;;  %v422_v60 = vsel %vm366_vm0, %v402_v58, 0.0 }
  0xdb   : > { %414 = vadd.xlane.f32.xlu1 %v413_v49  ;;  %411 = vadd.xlane.f32.xlu0 %v410_v50 }
  0xdf   : > { %420 = vadd.xlane.f32.xlu1 %v419_v55  ;;  %417 = vadd.xlane.f32.xlu0 %v416_v56 }
  0xe3   : > { %426 = vadd.xlane.f32.xlu1 %v425_v59  ;;  %423 = vadd.xlane.f32.xlu0 %v422_v60 }
  0xf4   : > { %558 = vperm.xlu1 %816, %v548_v62  }
  0xf8   : > { %568 = vperm.xlu1 %816, %v550_v63   ;;  %v351_v63 = vld [vmem:[%s1296_s5 + $0x8] sm:$0xff] }
  0xf9   : > { %563 = vperm.xlu0 %817, %v549_v7  }
  0xfc   : > { %578 = vperm.xlu1 %816, %v552_v3   ;;  %v350_v3 = vld [vmem:[%s1296_s5] sm:$0xff] }
  0xfd   : > { %573 = vperm.xlu0 %817, %v551_v10  }
 0x101   : > { %583 = vperm.xlu0 %817, %v553_v11  }
 0x164   : > { %v409_v22 = vpop.xlane.xlu1 %408  ;;  %v406_v23 = vpop.xlane.xlu0 %405 }
 0x165   : > { %v429_v24 = vadd.f32 %v409_v22, %v343_v16  ;;  %v428_v25 = vadd.f32 %v406_v23, %v342_v17  ;;  %v352_v23 = vld [vmem:[%s1296_s5 + $0x10] sm:$0xff] }
 0x167   : > { %v760_v28 = vmul.f32 -1.442695, %v429_v24  ;;  %v759_v29 = vmul.f32 -1.442695, %v428_v25 }
 0x168   : > { %v415_v30 = vpop.xlane.xlu1 %414  ;;  %v412_v31 = vpop.xlane.xlu0 %411 }
 0x169   : > { %818 = vpow2.f32 %v760_v28  ;;  %v431_v32 = vadd.f32 %v415_v30, %v345_v26  ;;  %v430_v33 = vadd.f32 %v412_v31, %v344_v27  ;;  %v555_v26 = vld [vmem:[%s1297_s6 + $0x38] sm:$0xff] }
 0x16a   : > { %820 = vpow2.f32 %v759_v29  ;;  %v353_v30 = vld [vmem:[%s1296_s5 + $0x18] sm:$0xff] }
 0x16b   : > { %v762_v36 = vmul.f32 -1.442695, %v431_v32  ;;  %v761_v37 = vmul.f32 -1.442695, %v430_v33 }
 0x16c   : > { %v421_v38 = vpop.xlane.xlu1 %420  ;;  %v418_v39 = vpop.xlane.xlu0 %417 }
 0x16d   : > { %822 = vpow2.f32 %v762_v36  ;;  %v433_v40 = vadd.f32 %v421_v38, %v347_v34  ;;  %v432_v41 = vadd.f32 %v418_v39, %v346_v35  ;;  %v354_v34 = vld [vmem:[%s1296_s5 + $0x20] sm:$0xff] }
 0x16e   : > { %824 = vpow2.f32 %v761_v37  ;;  %v355_v37 = vld [vmem:[%s1296_s5 + $0x28] sm:$0xff] }
 0x16f   : > { %v763_v43 = vmul.f32 -1.442695, %v432_v41  ;;  %v764_v44 = vmul.f32 -1.442695, %v433_v40  ;;  %v356_v40 = vld [vmem:[%s1296_s5 + $0x30] sm:$0xff] }
 0x170   : > { %v424_v45 = vpop.xlane.xlu0 %423  ;;  %v427_v47 = vpop.xlane.xlu1 %426 }
 0x171   : > { %v434_v48 = vadd.f32 %v424_v45, %v348_v42  ;;  %826 = vpow2.f32 %v763_v43  ;;  %v435_v52 = vadd.f32 %v427_v47, %v349_v46  ;;  %v357_v43 = vld [vmem:[%s1296_s5 + $0x38] sm:$0xff]  ;;  %v554_v45 = vld [vmem:[%s1297_s6 + $0x30] sm:$0xff] }
 0x172   : > { %828 = vpow2.f32 %v764_v44 }
 0x173   : > { %v819_v49 = vpop.eup %818  ;;  %v765_v53 = vmul.f32 -1.442695, %v434_v48  ;;  %v766_v57 = vmul.f32 -1.442695, %v435_v52 }
 0x174   : > { %v821_v50 = vpop.eup %820  ;;  %v461_v51 = vadd.f32 1.0, %v819_v49  ;;  %v559_v47 = vpop.permute.xlu1 %558 }
 0x175   : > { %v460_v54 = vadd.f32 1.0, %v821_v50 }
 0x176   : > { %830 = vrcp.f32 %v461_v51 }
 0x177   : > { %v823_v55 = vpop.eup %822  ;;  %832 = vrcp.f32 %v460_v54 }
 0x178   : > { %v825_v56 = vpop.eup %824  ;;  %834 = vpow2.f32 %v765_v53  ;;  %v463_v58 = vadd.f32 1.0, %v823_v55  ;;  %v564_v46 = vpop.permute.xlu0 %563 }
 0x179   : > { %v462_v59 = vadd.f32 1.0, %v825_v56  ;;  %v569_v49 = vpop.permute.xlu1 %568 }
 0x17b   : > { %836 = vrcp.f32 %v462_v59  ;;  %v827_v60 = vpop.eup %826 }
 0x17c   : > { %838 = vpow2.f32 %v766_v57  ;;  %v464_v61 = vadd.f32 1.0, %v827_v60  ;;  %v829_v62 = vpop.eup %828  ;;  %v574_v48 = vpop.permute.xlu0 %573 }
 0x17d   : > { %840 = vrcp.f32 %v463_v58  ;;  %v465_v11 = vadd.f32 1.0, %v829_v62  ;;  %v579_v51 = vpop.permute.xlu1 %578 }
 0x17e   : > { %842 = vrcp.f32 %v464_v61 }
 0x17f   : > { %844 = vrcp.f32 %v465_v11 }
 0x180   : > { %v831_v7 = vpop.eup %830  ;;  %v1198_v50 = vpop.permute.xlu0 %583 }
 0x181   : > { %v833_v10 = vpop.eup %832  ;;  %v485_v16 = vmul.f32 %v831_v7, %v351_v63 }
 0x182   : > { %v835_v17 = vpop.eup %834  ;;  %v484_v22 = vmul.f32 %v833_v10, %v350_v3 }
 0x183   : > { %499 = vperm.xlu1 %816, %v485_v16   ;;  %v466_v25 = vadd.f32 1.0, %v835_v17 }
 0x184   : > { %494 = vperm.xlu0 %817, %v484_v22  }
 0x185   : > { %v837_v24 = vpop.eup %836  ;;  %846 = vrcp.f32 %v466_v25 }
 0x186   : > { %v839_v27 = vpop.eup %838  ;;  %v486_v28 = vmul.f32 %v837_v24, %v352_v23 }
 0x187   : > { %v841_v29 = vpop.eup %840  ;;  %v467_v31 = vadd.f32 1.0, %v839_v27 }
 0x188   : > { %504 = vperm.xlu1 %816, %v486_v28   ;;  %593 = vperm.xlu0 %817, %v555_v26   ;;  %v487_v32 = vmul.f32 %v841_v29, %v353_v30  ;;  %v843_v33 = vpop.eup %842 }
 0x189   : > { %848 = vrcp.f32 %v467_v31  ;;  %v488_v35 = vmul.f32 %v843_v33, %v354_v34  ;;  %v845_v36 = vpop.eup %844 }
 0x18a   : > { %v489_v38 = vmul.f32 %v845_v36, %v355_v37 }
 0x18c   : > { %509 = vperm.xlu1 %816, %v487_v32  }
 0x18f   : > { %v847_v39 = vpop.eup %846 }
 0x190   : > { %514 = vperm.xlu1 %816, %v488_v35   ;;  %v490_v41 = vmul.f32 %v847_v39, %v356_v40 }
 0x193   : > { %v849_v42 = vpop.eup %848 }
 0x194   : > { %519 = vperm.xlu1 %816, %v489_v38   ;;  %v491_v44 = vmul.f32 %v849_v42, %v357_v43 }
 0x198   : > { %524 = vperm.xlu1 %816, %v490_v41  }
 0x19c   : > { %529 = vperm.xlu1 %816, %v491_v44  }
 0x1a0   : > { %588 = vperm.xlu1 %816, %v554_v45  }
 0x202   : > { %v500_v52 = vpop.permute.xlu1 %499 }
 0x203   : > { %v534_v53 = vmul.f32 %v500_v52, %v1021_v5  ;;  %v535_v54 = vmul.f32 %v500_v52, %v1023_v6  ;;  %v495_v55 = vpop.permute.xlu0 %494 }
 0x204   : > { %v532_v56 = vmul.f32 %v495_v55, %v1011_v0  ;;  %v533_v57 = vmul.f32 %v495_v55, %v1013_v1 }
 0x205   : > { %v598_v58 = vadd.f32 %v564_v46, %v534_v53  ;;  %v599_v59 = vadd.f32 %v564_v46, %v535_v54 }
 0x206   : > { %v596_v60 = vadd.f32 %v559_v47, %v532_v56  ;;  %v597_v61 = vadd.f32 %v559_v47, %v533_v57 }
 0x207   : > { %vm614_vm2 = vcmp.gt.f32.partialorder %v598_v58, 0.0  ;;  %vm615_vm3 = vcmp.gt.f32.partialorder %v599_v59, 0.0  ;;  %v630_v62 = vmul.f32 0.01, %v598_v58  ;;  %v631_v63 = vmul.f32 0.01, %v599_v59  ;;  %v505_v3 = vpop.permute.xlu1 %504 }
 0x208   : > { %vm612_vm4 = vcmp.gt.f32.partialorder %v596_v60, 0.0  ;;  %vm613_vm5 = vcmp.gt.f32.partialorder %v597_v61, 0.0  ;;  %v628_v7 = vmul.f32 0.01, %v596_v60  ;;  %v629_v5 = vmul.f32 0.01, %v597_v61 }
 0x209   : > { %v646_v10 = vsel %vm614_vm2, %v598_v58, %v630_v62  ;;  %v647_v6 = vsel %vm615_vm3, %v599_v59, %v631_v63  ;;  %v536_v11 = vmul.f32 %v505_v3, %v1015_v2  ;;  %v537_v0 = vmul.f32 %v505_v3, %v1019_v4 }
 0x20a   : > { %662 = vst [vmem:[%s1209_s18 + $0x10] sm:$0xff] %v646_v10  ;;  %663 = vst [vmem:[%s1209_s18 + $0x18] sm:$0xff] %v647_v6  ;;  %v644_v1 = vsel %vm612_vm4, %v596_v60, %v628_v7  ;;  %v645_v16 = vsel %vm613_vm5, %v597_v61, %v629_v5 }
 0x20b   : > { %660 = vst [vmem:[%s1209_s18] sm:$0xff] %v644_v1  ;;  %661 = vst [vmem:[%s1209_s18 + $0x8] sm:$0xff] %v645_v16  ;;  %v600_v17 = vadd.f32 %v569_v49, %v536_v11  ;;  %v601_v22 = vadd.f32 %v569_v49, %v537_v0  ;;  %v510_v23 = vpop.permute.xlu1 %509 }
 0x20c   : > { %v538_v2 = vmul.f32 %v510_v23, %v1027_v8  ;;  %v539_v4 = vmul.f32 %v510_v23, %v1029_v9 }
 0x20d   : > { %vm616_vm6 = vcmp.gt.f32.partialorder %v600_v17, 0.0  ;;  %vm617_vm7 = vcmp.gt.f32.partialorder %v601_v22, 0.0  ;;  %v632_v24 = vmul.f32 0.01, %v600_v17  ;;  %v633_v25 = vmul.f32 0.01, %v601_v22 }
 0x20e   : > { %v602_v26 = vadd.f32 %v574_v48, %v538_v2  ;;  %v603_v27 = vadd.f32 %v574_v48, %v539_v4 }
 0x20f   : > { %v648_v28 = vsel %vm616_vm6, %v600_v17, %v632_v24  ;;  %v649_v29 = vsel %vm617_vm7, %v601_v22, %v633_v25  ;;  %v515_v30 = vpop.permute.xlu1 %514 }
 0x210   : > { %664 = vst [vmem:[%s1209_s18 + $0x20] sm:$0xff] %v648_v28  ;;  %665 = vst [vmem:[%s1209_s18 + $0x28] sm:$0xff] %v649_v29  ;;  %vm618_vm8 = vcmp.gt.f32.partialorder %v602_v26, 0.0  ;;  %vm619_vm9 = vcmp.gt.f32.partialorder %v603_v27, 0.0  ;;  %v634_v31 = vmul.f32 0.01, %v602_v26  ;;  %v540_v8 = vmul.f32 %v515_v30, %v1035_v12 }
 0x211   : > { %v635_v32 = vmul.f32 0.01, %v603_v27  ;;  %v541_v9 = vmul.f32 %v515_v30, %v1037_v13 }
 0x212   : > { %v650_v33 = vsel %vm618_vm8, %v602_v26, %v634_v31  ;;  %v604_v35 = vadd.f32 %v579_v51, %v540_v8 }
 0x213   : > { %v651_v34 = vsel %vm619_vm9, %v603_v27, %v635_v32  ;;  %666 = vst [vmem:[%s1209_s18 + $0x30] sm:$0xff] %v650_v33  ;;  %v605_v36 = vadd.f32 %v579_v51, %v541_v9  ;;  %v520_v37 = vpop.permute.xlu1 %519 }
 0x214   : > { %667 = vst [vmem:[%s1209_s18 + $0x38] sm:$0xff] %v651_v34  ;;  %v542_v38 = vmul.f32 %v520_v37, %v1039_v14  ;;  %v543_v39 = vmul.f32 %v520_v37, %v1041_v15  ;;  %vm620_vm10 = vcmp.gt.f32.partialorder %v604_v35, 0.0  ;;  %v636_v40 = vmul.f32 0.01, %v604_v35 }
 0x215   : > { %vm621_vm11 = vcmp.gt.f32.partialorder %v605_v36, 0.0  ;;  %v637_v12 = vmul.f32 0.01, %v605_v36 }
 0x216   : > { %v606_v13 = vadd.f32 %v1198_v50, %v542_v38  ;;  %v607_v41 = vadd.f32 %v1198_v50, %v543_v39  ;;  %v652_v42 = vsel %vm620_vm10, %v604_v35, %v636_v40  ;;  %v594_v50 = vpop.permute.xlu0 %593 }
 0x217   : > { %v653_v43 = vsel %vm621_vm11, %v605_v36, %v637_v12  ;;  %v525_v44 = vpop.permute.xlu1 %524  ;;  %668 = vst [vmem:[%s1209_s18 + $0x40] sm:$0xff] %v652_v42 }
 0x218   : > { %669 = vst [vmem:[%s1209_s18 + $0x48] sm:$0xff] %v653_v43  ;;  %vm622_vm12 = vcmp.gt.f32.partialorder %v606_v13, 0.0  ;;  %vm623_vm13 = vcmp.gt.f32.partialorder %v607_v41, 0.0  ;;  %v638_v14 = vmul.f32 0.01, %v606_v13  ;;  %v544_v53 = vmul.f32 %v525_v44, %v1047_v18 }
 0x219   : > { %v639_v15 = vmul.f32 0.01, %v607_v41  ;;  %v545_v54 = vmul.f32 %v525_v44, %v1049_v19 }
 0x21a   : > { %v654_v45 = vsel %vm622_vm12, %v606_v13, %v638_v14 }
 0x21b   : > { %v655_v46 = vsel %vm623_vm13, %v607_v41, %v639_v15  ;;  %670 = vst [vmem:[%s1209_s18 + $0x50] sm:$0xff] %v654_v45  ;;  %v530_v47 = vpop.permute.xlu1 %529 }
 0x21c   : > { %671 = vst [vmem:[%s1209_s18 + $0x58] sm:$0xff] %v655_v46  ;;  %v546_v48 = vmul.f32 %v530_v47, %v1051_v20  ;;  %v547_v49 = vmul.f32 %v530_v47, %v1053_v21 }
 0x21e   : > { %v610_v51 = vadd.f32 %v594_v50, %v546_v48  ;;  %v611_v52 = vadd.f32 %v594_v50, %v547_v49 }
 0x21f   : > { %v589_v55 = vpop.permute.xlu1 %588 }
 0x220   : > { %vm626_vm14 = vcmp.gt.f32.partialorder %v610_v51, 0.0  ;;  %vm627_vm15 = vcmp.gt.f32.partialorder %v611_v52, 0.0  ;;  %v642_v56 = vmul.f32 0.01, %v610_v51  ;;  %v643_v57 = vmul.f32 0.01, %v611_v52 }
 0x221   : > { %v608_v20 = vadd.f32 %v589_v55, %v544_v53  ;;  %v609_v21 = vadd.f32 %v589_v55, %v545_v54 }
 0x222   : > { %v658_v58 = vsel %vm626_vm14, %v610_v51, %v642_v56  ;;  %v659_v59 = vsel %vm627_vm15, %v611_v52, %v643_v57 }
 0x223   : > { %674 = vst [vmem:[%s1209_s18 + $0x70] sm:$0xff] %v658_v58  ;;  %675 = vst [vmem:[%s1209_s18 + $0x78] sm:$0xff] %v659_v59  ;;  %vm624_vm0 = vcmp.gt.f32.partialorder %v608_v20, 0.0  ;;  %vm625_vm1 = vcmp.gt.f32.partialorder %v609_v21, 0.0  ;;  %v640_v18 = vmul.f32 0.01, %v608_v20 }
 0x224   : > { %v641_v19 = vmul.f32 0.01, %v609_v21 }
 0x225   : > { %v656_v60 = vsel %vm624_vm0, %v608_v20, %v640_v18 }
 0x226   : > { %v657_v61 = vsel %vm625_vm1, %v609_v21, %v641_v19  ;;  %672 = vst [vmem:[%s1209_s18 + $0x60] sm:$0xff] %v656_v60 }
 0x227   : > { %673 = vst [vmem:[%s1209_s18 + $0x68] sm:$0xff] %v657_v61 }
 0x228   : > { %863 = shalt.err (!%p860_p3)
}
 0x229   : > { %s864_s14 = scalar_lea.hbm %s1242_s22, 2048  ;;  %s868_s17 = scalar_lea.hbm %s1298_s7, 4096 }
 0x22a   : > { %p865_p4 = scmp.ne.s32.totalorder %s1242_s22, %s864_s14  ;;  %p869_p9 = scmp.lt.u32.totalorder %s1242_s22, %s1298_s7 }
 0x22b   : > { %p870_p10 = scmp.lt.u32.totalorder %s868_s17, %s864_s14  ;;  %p872_p12 = scmp.lt.u32.totalorder %s864_s14, %s1242_s22 }
 0x22c   : > { %p866_p7 = pnand %p865_p4, %p996_p5 }
 0x22d   : > { %p871_p11 = por %p870_p10, %p869_p9 }
 0x22e   : > { %p867_p8 = pneg %p866_p7 }
 0x22f   : > { %p873_p13 = por %p872_p12, %p871_p11 }
 0x231   : > { %p874_p0 = pnand %p873_p13, %p867_p8 }
 0x233   : > { %877 = shalt.err (!%p874_p0)
}
 0x234   : > { %s916_s28 = smov 256   ;;  %s917_s21 = smov 16  }
 0x235   : > { %774 = dma.vmem_to_hbm [thread:$0]  (%p996_p5), %s1244_s20, 2048, %s1242_s22, %s1250_s23, %s916_s28, %s916_s28, %s917_s21  }
 0x236 PF: > { %p780_p1 = scmp.ge.s32.totalorder %s912_s27, 2  ;;  %s705_s29 = sand.u32 1, %s900_s24  }
 0x237   : > { %s706_s8 = scalar_lea.sflag [#allocation3], %s705_s29 }
 0x238   : > { %p777_p2 = pnand %p780_p1, %p1000_p6 }
 0x23a   : > { %895 = dma.done.wait (!%p777_p2), %s706_s8, 2048  }
 0x23b   : > { %897 = vsyncadd (!%p777_p2), %s706_s8, 4294965248  ;;  %p17_p3 = scmp.ge.s32.totalorder %s983_s30, 4   ;;  %s1301_s24 = smov %s904_s25 }
 0x23c   : > { %s1302_s25 = smov %s908_s26  ;;  %s1303_s26 = smov %s994_s10 }
 0x23d   : > { %s1304_s27 = smov %s983_s30  ;;  %19 = sbr.rel (!%p17_p3) target bundleno = 3 (0x3), region = 83 }
 0x244   :  { %711 = vsyncpa [#allocation3], 1 }
 0x245   :  { %713 = vsyncpa [#allocation3 + $0x1], 1 }

</bundles_post_ra>
